<compile_context>
chip_gen: v7x
topology: tpu7x:2x2x1
jax: 0.10.0
libtpu: 0.0.40
codegen_flags: <defaults>
</compile_context>

<pallas_src>
import jax
import jax.numpy as jnp
from jax.experimental import pallas as pl
from jax.experimental.pallas import tpu as pltpu

SUBLANES = 8            # f32 sublanes per vreg
MAX_TILE_LANES = 8192   # lanes per grid step (64K batch elems / ~1.5 MiB dbuf)


def _round_up(x: int, m: int) -> int:
    return ((x + m - 1) // m) * m


def linear_kernel(xt_ref, w_ref, b_ref, o_ref):
    # xt_ref: (IN, 8, L) f32 in VMEM   -- sublane/lane-dense batch slab
    # w_ref:  (IN,)      f32 in SMEM   -- scalar weights (OUT == 1)
    # b_ref:  (1,)       f32 in SMEM   -- scalar bias
    # o_ref:  (8, L)     f32 in VMEM
    in_features = xt_ref.shape[0]
    # K=IN (=2) contraction on the VPU: SMEM scalar * dense VMEM slab.
    acc = xt_ref[0] * w_ref[0]
    for k in range(1, in_features):     # static, tiny (IN == 2)
        acc = acc + xt_ref[k] * w_ref[k]
    o_ref[...] = acc + b_ref[0]


def dummy_net_forward_features_major(xt, weight, bias, tile_lanes=None):
    """xt: (IN, B) f32 (features-major), weight: (OUT, IN), bias: (OUT,) -> (B, OUT).

    Only OUT == 1 is supported (DummyNet's nn.Linear(2, 1)).
    """
    IN, B = xt.shape
    OUT = weight.shape[0]
    assert OUT == 1, "DummyNet has a single output feature"
    assert weight.shape[1] == IN

    # --- Tiling over the batch: batch index b -> (sublane s, lane l) ---------
    lanes_needed = pl.cdiv(B, SUBLANES)
    if tile_lanes is None:
        tile_lanes = min(MAX_TILE_LANES, _round_up(lanes_needed, 128))
    assert tile_lanes % 128 == 0, "lane tile must be a multiple of 128"
    lanes_padded = _round_up(lanes_needed, tile_lanes)
    b_pad = SUBLANES * lanes_padded
    num_blocks = lanes_padded // tile_lanes

    xt = xt.astype(jnp.float32)
    if b_pad != B:
        xt = jnp.pad(xt, ((0, 0), (0, b_pad - B)))      # tail rows are garbage,
    xt = xt.reshape(IN, SUBLANES, lanes_padded)          # sliced off below (free reshape)

    w_flat = weight.astype(jnp.float32).reshape(IN)      # SMEM scalars
    b_flat = bias.astype(jnp.float32).reshape(OUT)

    out = pl.pallas_call(
        linear_kernel,
        grid=(num_blocks,),
        out_shape=jax.ShapeDtypeStruct((SUBLANES, lanes_padded), jnp.float32),
        in_specs=[
            # Streamed, double-buffered batch slab: (IN, 8, tile_lanes).
            pl.BlockSpec((IN, SUBLANES, tile_lanes), lambda i: (0, 0, i)),
            # Tiny scalar params live in SMEM for the whole call.
            pl.BlockSpec(memory_space=pltpu.MemorySpace.SMEM),
            pl.BlockSpec(memory_space=pltpu.MemorySpace.SMEM),
        ],
        out_specs=pl.BlockSpec((SUBLANES, tile_lanes), lambda i: (0, i)),
        compiler_params=pltpu.CompilerParams(
            dimension_semantics=("parallel",),   # v7x: shard batch over 2 TCs
        ),
        cost_estimate=pl.CostEstimate(
            flops=2 * IN * b_pad,
            transcendentals=0,
            bytes_accessed=4 * (IN + OUT) * b_pad,
        ),
    )(xt, w_flat, b_flat)

    # (8, lanes_padded) -> (b_pad,) -> (B, 1): contiguous reshapes, no transpose.
    return out.reshape(b_pad)[:B].reshape(B, OUT)


def dummy_net_forward(x, weight, bias, tile_lanes=None):
    """PyTorch-layout entry point: x (B, IN) -> (B, OUT) with y = x @ W^T + b."""
    # One transpose pass to the features-major layout the kernel streams;
    # producers that already have (IN, B) data should call
    # dummy_net_forward_features_major directly and avoid this HBM pass.
    return dummy_net_forward_features_major(
        jnp.transpose(x.astype(jnp.float32)), weight, bias, tile_lanes=tile_lanes)


if __name__ == "__main__":
    # Deterministic parameter init (PyTorch Linear(2, 1) shapes: W (1,2), b (1,)).
    key = jax.random.PRNGKey(0)
    kw, kb, kx = jax.random.split(key, 3)
    bound = 1.0 / jnp.sqrt(2.0)  # PyTorch default uniform bound = 1/sqrt(fan_in)
    weight = jax.random.uniform(kw, (1, 2), jnp.float32, -bound, bound)
    bias = jax.random.uniform(kb, (1,), jnp.float32, -bound, bound)

    # Same input as the PyTorch script (B=2).
    x = jnp.array([[1.0, 2.0], [3.0, 4.0]], dtype=jnp.float32)
    out = jax.block_until_ready(dummy_net_forward(x, weight, bias))
    ref = x @ weight.T + bias
    assert out.shape == (2, 1)
    assert jnp.allclose(out, ref, atol=1e-5), (out, ref)

    # Larger batch exercising the grid (2 blocks) + tail padding path.
    x_big = jax.random.normal(kx, (2000, 2), jnp.float32)
    out_big = jax.block_until_ready(
        dummy_net_forward(x_big, weight, bias, tile_lanes=128))
    ref_big = x_big @ weight.T + bias
    assert out_big.shape == (2000, 1)
    assert jnp.allclose(out_big, ref_big, atol=1e-5)

    print("KERNEL_OK")
</pallas_src>

<mosaic_0001>
module attributes {stable_mosaic.version = 11 : i64} {
  func.func @linear_kernel(%arg0: i32, %arg1: memref<2x8x128xf32, #tpu.memory_space<vmem>>, %arg2: memref<2xf32, #tpu.memory_space<smem>>, %arg3: memref<1xf32, #tpu.memory_space<smem>>, %arg4: memref<8x128xf32, #tpu.memory_space<vmem>>) attributes {dimension_semantics = [#tpu.dimension_semantics<parallel>], iteration_bounds = array<i64: 1>, scalar_prefetch = 0 : i64, scratch_operands = 0 : i64, tpu.core_type = #tpu.core_type<tc>, window_params = [{transform_indices = @transform_0, window_bounds = array<i64: 2, 8, 128>}, {transform_indices = @transform_1, window_bounds = array<i64: 2>}, {transform_indices = @transform_2, window_bounds = array<i64: 1>}, {transform_indices = @transform_3, window_bounds = array<i64: 8, 128>}]} {
    %c0 = arith.constant 0 : index
    %c0_0 = arith.constant 0 : index
    %c0_1 = arith.constant 0 : index
    %0 = vector.load %arg1[%c0, %c0_0, %c0_1] : memref<2x8x128xf32, #tpu.memory_space<vmem>>, vector<1x8x128xf32>
    %1 = vector.shape_cast %0 : vector<1x8x128xf32> to vector<8x128xf32>
    %c0_2 = arith.constant 0 : index
    %2 = memref.load %arg2[%c0_2] : memref<2xf32, #tpu.memory_space<smem>>
    %3 = vector.broadcast %2 : f32 to vector<8x128xf32>
    %4 = arith.mulf %1, %3 : vector<8x128xf32>
    %c1 = arith.constant 1 : index
    %c0_3 = arith.constant 0 : index
    %c0_4 = arith.constant 0 : index
    %5 = vector.load %arg1[%c1, %c0_3, %c0_4] : memref<2x8x128xf32, #tpu.memory_space<vmem>>, vector<1x8x128xf32>
    %6 = vector.shape_cast %5 : vector<1x8x128xf32> to vector<8x128xf32>
    %c1_5 = arith.constant 1 : index
    %7 = memref.load %arg2[%c1_5] : memref<2xf32, #tpu.memory_space<smem>>
    %8 = vector.broadcast %7 : f32 to vector<8x128xf32>
    %9 = arith.mulf %6, %8 : vector<8x128xf32>
    %10 = arith.addf %4, %9 : vector<8x128xf32>
    %c0_6 = arith.constant 0 : index
    %11 = memref.load %arg3[%c0_6] : memref<1xf32, #tpu.memory_space<smem>>
    %12 = vector.broadcast %11 : f32 to vector<8x128xf32>
    %13 = arith.addf %10, %12 : vector<8x128xf32>
    %c0_7 = arith.constant 0 : index
    %c0_8 = arith.constant 0 : index
    %14 = vector.load %arg4[%c0_7, %c0_8] : memref<8x128xf32, #tpu.memory_space<vmem>>, vector<8x128xf32>
    tpu.vector_store %arg4[%c0_7, %c0_8], %13 {strides = array<i32>} : memref<8x128xf32, #tpu.memory_space<vmem>>, vector<8x128xf32>,
    return
  }
  func.func @transform_0(%arg0: i32) -> (i32, i32, i32) {
    %c0_i32 = arith.constant 0 : i32
    %c0_i32_0 = arith.constant 0 : i32
    %c0_i32_1 = arith.constant 0 : i32
    return %c0_i32, %c0_i32_0, %arg0 : i32, i32, i32
  }
  func.func @transform_1(%arg0: i32) -> i32 {
    %c0_i32 = arith.constant 0 : i32
    %c0_i32_0 = arith.constant 0 : i32
    return %c0_i32 : i32
  }
  func.func @transform_2(%arg0: i32) -> i32 {
    %c0_i32 = arith.constant 0 : i32
    %c0_i32_0 = arith.constant 0 : i32
    return %c0_i32 : i32
  }
  func.func @transform_3(%arg0: i32) -> (i32, i32) {
    %c0_i32 = arith.constant 0 : i32
    %c0_i32_0 = arith.constant 0 : i32
    return %c0_i32, %arg0 : i32, i32
  }
}

</mosaic_0001>

<bundles_post_ra>
// kernel: tpu_custom_call.1
= control target key start
LH: loop header
LB: loop body
LE: loop exit
PB: predicated region body
PF: predicated region fallthrough
CT: control target
= control target key end

     0   :  { %9 = vsyncpa [#allocation4], 0  ;;  %s196_s0 = inlined_call_operand.hbm [shape: f32[2,8,128], index: 0, kind: input, shape index: {}]   ;;  %s197_s1 = inlined_call_operand.vmem [shape: f32[2], index: 1, kind: input, shape index: {}]   ;;  %s198_s2 = inlined_call_operand.<no memory space> [shape: f32[1], index: 2, kind: input, shape index: {}]   ;;  %s199_s3 = inlined_call_operand.hbm [shape: f32[8,128], index: 3, kind: output, shape index: {}]  }
   0x1   :  { %10 = vsyncpa [#allocation6], 0 }
   0x2   :  { %11 = vsyncpa [#allocation5], 0  ;;  %s141_s12 = smov [#allocation3]   ;;  %s30_s16 = sshll.u32 %s197_s1, 4  ;;  %s31_s16 = int_to_ptr.vmem [resolvable:$true] %s30_s16 }
   0x3   :  { %s17_s13 = sshll.u32 %s141_s12, 4  ;;  %s79_s19 = scalar_lea.hbm %s196_s0, 256  ;;  %s18_s13 = int_to_ptr.vmem [resolvable:$true] %s17_s13 }
   0x4   :  { %p80_p0 = scmp.ne.s32.totalorder %s196_s0, %s79_s19  ;;  %p83_p1 = scmp.lt.u32.totalorder %s79_s19, %s196_s0 }
   0x6   :  { %p85_p2 = pnand %p83_p1, %p80_p0 }
   0x8   :  { %88 = shalt.err (!%p85_p2)
}
   0x9   :  { %s89_s24 = scalar_lea.vmem %s18_s13, 256  ;;  %p94_p4 = scmp.lt.s32.totalorder %s18_s13, %s18_s13 }
   0xa   :  { %p90_p3 = scmp.ne.s32.totalorder %s18_s13, %s89_s24  ;;  %p95_p5 = scmp.lt.s32.totalorder %s89_s24, %s89_s24 }
   0xc   :  { %p96_p6 = por %p95_p5, %p94_p4 }
   0xe   :  { %p97_p7 = pnand %p96_p6, %p90_p3 }
  0x10   :  { %100 = shalt.err (!%p97_p7)
}
  0x11   :  { %s142_s1 = smov 128   ;;  %s143_s25 = smov 8  }
  0x12   :  { %23 = dma.hbm_to_vmem [thread:$0]  %s196_s0, 256, %s18_s13, [#allocation4], %s142_s1, %s142_s1, %s143_s25  }
  0x13   :  { %s101_s28 = scalar_lea.vmem %s31_s16, 16  ;;  %p106_p9 = scmp.lt.s32.totalorder %s31_s16, %s31_s16 }
  0x14   :  { %p102_p8 = scmp.ne.s32.totalorder %s31_s16, %s101_s28  ;;  %p107_p10 = scmp.lt.s32.totalorder %s101_s28, %s101_s28 }
  0x16   :  { %p108_p11 = por %p107_p10, %p106_p9 }
  0x18   :  { %p109_p12 = pnand %p108_p11, %p102_p8 }
  0x1a   :  { %112 = shalt.err (!%p109_p12)
}
  0x1b   :  { %s144_s29 = smov [#allocation7]  }
  0x1c   :  { %33 = dma.vmem_to_smem %s31_s16, 16, %s144_s29, [#allocation6]  }
  0x1d   :  { %135 = dma.done.wait [#allocation4], 256  }
  0x1e   :  { %136 = vsyncadd [#allocation4], 4294967040 }
  0x1f   :  { %137 = dma.done.wait [#allocation6], 16  }
  0x20   :  { %138 = vsyncadd [#allocation6], 4294967280 }
  0x21   :  { %42 = sfence }
  0x22   :  { %s44_s30 = sld [smem:[#allocation7]]  ;;  %s73_s4 = sld [smem:[#allocation7 + $0x1]]  ;;  %v43_v0 = vld [vmem:[#allocation3] sm:$0xff]  ;;  %v48_v1 = vld [vmem:[#allocation3 + $0x8] sm:$0xff]  ;;  %v54_v6 = vstv %s198_s2 }
  0x23   :  { %s145_s6 = smov [#allocation8]  }
  0x24   :  { %s63_s7 = sshll.u32 %s145_s6, 4  ;;  %s64_s7 = int_to_ptr.vmem [resolvable:$true] %s63_s7 }
  0x25   :  { %s113_s8 = scalar_lea.vmem %s64_s7, 128  ;;  %p118_p0 = scmp.lt.s32.totalorder %s64_s7, %s64_s7 }
  0x26   :  { %p114_p13 = scmp.ne.s32.totalorder %s64_s7, %s113_s8  ;;  %p119_p1 = scmp.lt.s32.totalorder %s113_s8, %s113_s8 }
  0x28   :  { %v45_v2 = vstv %s44_s30  ;;  %v50_v3 = vstv %s73_s4  ;;  %p120_p2 = por %p119_p1, %p118_p0 }
  0x29   :  { %v46_v4 = vmul.f32 %v45_v2, %v43_v0  ;;  %v51_v5 = vmul.f32 %v50_v3, %v48_v1 }
  0x2a   :  { %p121_p3 = pnand %p120_p2, %p114_p13 }
  0x2b   :  { %v52_v7 = vadd.f32 %v51_v5, %v46_v4 }
  0x2d   :  { %v55_v8 = vadd.f32 %v54_v6, %v52_v7 }
  0x2f   :  { %56 = vst [vmem:[#allocation8] sm:$0xff] %v55_v8 }
  0x30   :  { %124 = shalt.err (!%p121_p3)
}
  0x31   :  { %s125_s11 = scalar_lea.hbm %s199_s3, 128 }
  0x32   :  { %p126_p4 = scmp.ne.s32.totalorder %s199_s3, %s125_s11  ;;  %p129_p5 = scmp.lt.u32.totalorder %s125_s11, %s199_s3 }
  0x34   :  { %p131_p6 = pnand %p129_p5, %p126_p4 }
  0x36   :  { %134 = shalt.err (!%p131_p6)
}
  0x37   :  { %66 = dma.vmem_to_hbm [thread:$0]  %s64_s7, 128, %s199_s3, [#allocation5]  }
  0x38   :  { %139 = dma.done.wait [#allocation5], 128  }
  0x39   :  { %140 = vsyncadd [#allocation5], 4294967168 }
  0x3a   :  { %70 = vsyncpa [#allocation4], 1 }
  0x3b   :  { %71 = vsyncpa [#allocation5], 1 }
  0x3c   :  { %72 = vsyncpa [#allocation6], 1 }

</bundles_post_ra>
